<compile_context>
chip_gen: v7x
topology: tpu7x:2x2x1
jax: 0.10.0
libtpu: 0.0.40
codegen_flags: <defaults>
</compile_context>

<pallas_src>
import jax
import jax.numpy as jnp
import numpy as np
from jax import lax
from jax.experimental import pallas as pl
from jax.experimental.pallas import tpu as pltpu

B, N = 2, 8                 # batch, num_nodes
F_IN, F_OUT = 16, 32        # in_features, out_features
E, H = 8, 2                 # num_edge_features, num_attn_heads
HS = F_OUT // H             # head_size
GN = B * N                  # total ("global") node count
EPS = 1e-5                  # nn.LayerNorm default eps
SLOPE = 0.2                 # LeakyReLU negative slope
_SQRT_2_OVER_PI = 0.7978845608028654

# ---- parameter-slab row offsets (all multiples of 8) --------------------
_R_WN,    _NR_WN = 8,   F_IN          # wn_aug              (16, F_OUT+H)
_R_AC,    _NR_AC = 24,  H * GN        # [A_c | c_bias]      (32, F_IN+1)
_R_WE1,   _NR_WE1 = 56,  N * E        # block-diag we1      (64, 128)
_R_WE2,   _NR_WE2 = 120, N * 2 * E    # block-diag we2      (128, 64)
_R_MAVG,  _NR_MAVG = 248, N * E       # segmented-mean mat  (64, 64)
_R_AEDGE, _NR_AEDGE = 312, N * E      # edge-attn scatter   (64, 16)
_R_WO,    _NR_WO = 376, F_OUT         # wo_wide             (32, 64)
_R_WR,    _NR_WR = 408, F_IN          # wr (residual proj)  (16, 32)
_SLAB_ROWS = _R_WR + _NR_WR           # 424


def _leaky(x):
    return jnp.where(x >= 0.0, x, SLOPE * x)


def _gelu_tanh(x):
    # tanh-approx GELU (single EUP tanh); |err| vs exact erf GELU < 4e-4,
    # well inside the 1e-2 parity tolerance.
    return 0.5 * x * (1.0 + jnp.tanh(_SQRT_2_OVER_PI * (x + 0.044715 * x * x * x)))


def _dot_bt(a, b):
    # a: (M, K), b: (P, K) -> a @ b.T  (avoids in-kernel transposes)
    return lax.dot_general(a, b, (((1,), (1,)), ((), ())),
                           preferred_element_type=jnp.float32)


def _gat_kernel(node_ref, edge_ref, adj_ref, slab_ref,
                out_node_ref, out_edge_ref):
    f32 = jnp.float32
    x = node_ref[...]            # (GN, F_IN)
    ef = edge_ref[...]           # (GN, N*E)   lane-dense edge layout
    adjs = adj_ref[...]          # (H*GN, GN)  batch-block-diag mask, stacked per head

    # ---- unpack the single parameter slab (static VMEM slices) ----
    ln1_g = slab_ref[0:1, 0:F_IN]
    ln1_b = slab_ref[1:2, 0:F_IN]
    ln2_g = slab_ref[2:3, 0:N * E]
    ln2_b = slab_ref[3:4, 0:N * E]
    bn_aug = slab_ref[4:5, 0:F_OUT + H]
    be1 = slab_ref[5:6, 0:N * 2 * E]
    be2 = slab_ref[6:7, 0:N * E]
    b_fin = slab_ref[7:8, 0:F_OUT]                                    # bo + br fused
    wn_aug = slab_ref[_R_WN:_R_WN + _NR_WN, 0:F_OUT + H]              # (16, 34)
    a_c_stk = slab_ref[_R_AC:_R_AC + _NR_AC, 0:F_IN]                  # (32, 16)
    c_bias = slab_ref[_R_AC:_R_AC + _NR_AC, F_IN:F_IN + 1]            # (32, 1)
    we1_blk = slab_ref[_R_WE1:_R_WE1 + _NR_WE1, 0:N * 2 * E]          # (64, 128)
    we2_blk = slab_ref[_R_WE2:_R_WE2 + _NR_WE2, 0:N * E]              # (128, 64)
    m_avg = slab_ref[_R_MAVG:_R_MAVG + _NR_MAVG, 0:N * E]             # (64, 64)
    a_edge_dup = slab_ref[_R_AEDGE:_R_AEDGE + _NR_AEDGE, 0:GN]        # (64, 16)
    wo_wide = slab_ref[_R_WO:_R_WO + _NR_WO, 0:H * F_OUT]             # (32, 64)
    wr = slab_ref[_R_WR:_R_WR + _NR_WR, 0:F_OUT]                      # (16, 32)

    # ---- node branch: LayerNorm -> projection (r-term columns folded in) ----
    mu = jnp.mean(x, axis=-1, keepdims=True)
    var = jnp.mean((x - mu) ** 2, axis=-1, keepdims=True)
    xn = (x - mu) * lax.rsqrt(var + EPS) * ln1_g + ln1_b              # (GN, F_IN)
    h_aug = jnp.dot(xn, wn_aug, preferred_element_type=f32) + bn_aug  # (GN, F_OUT+H)
    h = h_aug[:, :F_OUT]
    r_all = h_aug[:, F_OUT:F_OUT + H]                                 # (GN, H) target-node term

    # source-node (column) term, already replicated per (head, stack-row):
    # runs off xn, independent of the h matmul (folded projection).
    c_both = _dot_bt(a_c_stk, xn) + c_bias                            # (H*GN, GN)

    # ---- edge branch in (GN, N*E) layout: LN -> Linear/GELU/Linear -> +res ----
    mean_e = jnp.dot(ef, m_avg, preferred_element_type=f32)           # per-edge-group mean
    cen = ef - mean_e
    var_e = jnp.dot(cen * cen, m_avg, preferred_element_type=f32)
    en = cen * lax.rsqrt(var_e + EPS) * ln2_g + ln2_b
    h1 = _gelu_tanh(jnp.dot(en, we1_blk, preferred_element_type=f32) + be1)   # (GN, 128)
    ne = jnp.dot(h1, we2_blk, preferred_element_type=f32) + be2 + ef          # (GN, N*E)
    out_edge_ref[...] = ne                                            # lane-dense store

    # per-edge attention contribution, columns duplicated per batch block
    # (cross-batch columns are masked out below).
    e_dup = jnp.dot(ne, a_edge_dup, preferred_element_type=f32)       # (GN, GN)

    # ---- fused attention logits / softmax over ALL heads & batches ----
    e_both = jnp.concatenate([e_dup] * H, axis=0)                     # (H*GN, GN)
    r_both = jnp.concatenate([r_all[:, hh:hh + 1] for hh in range(H)], axis=0)  # (H*GN, 1)
    logits = _leaky(r_both + c_both + e_both)
    # NOTE: reference masks with -inf *before* LeakyReLU; masking afterwards with
    # -1e30 is equivalent because masked entries are re-zeroed via where(mask,...)
    # and fully-masked rows are zeroed via the denom>0 gate (nan_to_num(0)).
    mask = adjs != 0.0
    logits = jnp.where(mask, logits, f32(-1e30))
    row_max = jnp.max(logits, axis=-1, keepdims=True)
    pexp = jnp.where(mask, jnp.exp(logits - row_max), 0.0)
    denom = jnp.sum(pexp, axis=-1, keepdims=True)
    inv = pl.reciprocal(jnp.maximum(denom, f32(1e-30)), approx=True)  # EUP slot
    coeff = jnp.where(denom > 0.0, pexp * inv, 0.0)                   # (H*GN, GN)

    # ---- message passing + out-projection + residual (dropout = eval identity) ----
    # TODO(synk): nn.Dropout(p=0.2) treated as eval-mode identity.
    vo = jnp.dot(h, wo_wide, preferred_element_type=f32)              # (GN, H*F_OUT)
    y = jnp.dot(x, wr, preferred_element_type=f32) + b_fin            # residual + fused bias
    for hh in range(H):                                               # H=2, unrolled
        coeff_h = coeff[hh * GN:(hh + 1) * GN, :]                     # (GN, GN) block-diag by batch
        vo_h = vo[:, hh * F_OUT:(hh + 1) * F_OUT]                     # (GN, F_OUT)
        y = y + jnp.dot(coeff_h, vo_h, preferred_element_type=f32)
    out_node_ref[...] = _leaky(y)                                     # single full-tile store


# --------------------------------------------------------------------------
# Parameters (PyTorch-equivalent parameterization: Linear applied as x @ W + b).
# --------------------------------------------------------------------------
def init_params(key):
    ks = jax.random.split(key, 10)
    s = 0.2
    return {
        "ln1_g": jnp.ones((1, F_IN), jnp.float32),
        "ln1_b": jnp.zeros((1, F_IN), jnp.float32),
        "wn": s * jax.random.normal(ks[0], (F_IN, F_OUT), jnp.float32),
        "bn": 0.1 * jax.random.normal(ks[1], (1, F_OUT), jnp.float32),
        "ln2_g": jnp.ones((1, E), jnp.float32),
        "ln2_b": jnp.zeros((1, E), jnp.float32),
        "we1": s * jax.random.normal(ks[2], (E, 2 * E), jnp.float32),
        "be1": 0.1 * jax.random.normal(ks[3], (1, 2 * E), jnp.float32),
        "we2": s * jax.random.normal(ks[4], (2 * E, E), jnp.float32),
        "be2": 0.1 * jax.random.normal(ks[5], (1, E), jnp.float32),
        "attn_a": s * jax.random.normal(ks[6], (H, 2 * HS + E), jnp.float32),
        "wo": s * jax.random.normal(ks[7], (F_OUT, F_OUT), jnp.float32),
        "bo": 0.1 * jax.random.normal(ks[8], (1, F_OUT), jnp.float32),
        "wr": s * jax.random.normal(ks[9], (F_IN, F_OUT), jnp.float32),
        "br": jnp.zeros((1, F_OUT), jnp.float32),
    }


def _pack_params(p):
    """All parameter-only math hoisted out of the kernel; returns ONE (424,128) slab."""
    f32 = jnp.float32
    wn, bn = p["wn"], p["bn"]
    a_sum = jnp.sum(p["attn_a"], axis=0)                    # heads summed (ref: @A.T then sum(-1))
    a_row, a_col, a_edge = a_sum[:HS], a_sum[HS:2 * HS], a_sum[2 * HS:]

    p_r = jnp.zeros((F_OUT, H), f32)                        # per-head row-term placement
    a_colp = jnp.zeros((H, F_OUT), f32)                     # per-head col-term placement
    wo_wide = jnp.zeros((F_OUT, H * F_OUT), f32)            # per-head out-projection blocks
    for hh in range(H):
        p_r = p_r.at[hh * HS:(hh + 1) * HS, hh].set(a_row)
        a_colp = a_colp.at[hh, hh * HS:(hh + 1) * HS].set(a_col)
        wo_wide = wo_wide.at[hh * HS:(hh + 1) * HS,
                             hh * F_OUT:(hh + 1) * F_OUT].set(p["wo"][hh * HS:(hh + 1) * HS, :])

    wn_aug = jnp.concatenate([wn, wn @ p_r], axis=1)        # (F_IN, F_OUT+H)
    bn_aug = jnp.concatenate([bn[0], bn[0] @ p_r])          # (F_OUT+H,)
    a_c = a_colp @ wn.T                                     # (H, F_IN)  col-term folded into proj
    c_bias = a_colp @ bn[0]                                 # (H,)
    a_c_blk = jnp.concatenate([jnp.repeat(a_c, GN, axis=0),
                               jnp.repeat(c_bias, GN)[:, None]], axis=1)   # (H*GN, F_IN+1)
    b_fin = p["bo"][0] + p["br"][0]                         # fused bo + br

    eye_n = jnp.eye(N, dtype=f32)
    we1_blk = jnp.kron(eye_n, p["we1"])                     # (N*E, N*2E) block-diag edge MLP-1
    we2_blk = jnp.kron(eye_n, p["we2"])                     # (N*2E, N*E) block-diag edge MLP-2
    m_avg = jnp.kron(eye_n, jnp.full((E, E), 1.0 / E, f32)) # segmented mean (and its broadcast)
    a_edge_dup = jnp.tile(jnp.kron(eye_n, a_edge.reshape(E, 1)), (1, B))   # (N*E, GN)

    vec_rows = jnp.zeros((8, 128), f32)

    def setrow(m, i, v):
        v = jnp.asarray(v, f32).reshape(-1)
        return m.at[i, :v.shape[0]].set(v)

    vec_rows = setrow(vec_rows, 0, p["ln1_g"])
    vec_rows = setrow(vec_rows, 1, p["ln1_b"])
    vec_rows = setrow(vec_rows, 2, jnp.tile(p["ln2_g"].reshape(-1), N))
    vec_rows = setrow(vec_rows, 3, jnp.tile(p["ln2_b"].reshape(-1), N))
    vec_rows = setrow(vec_rows, 4, bn_aug)
    vec_rows = setrow(vec_rows, 5, jnp.tile(p["be1"].reshape(-1), N))
    vec_rows = setrow(vec_rows, 6, jnp.tile(p["be2"].reshape(-1), N))
    vec_rows = setrow(vec_rows, 7, b_fin)

    def blk(a, rows):
        a = jnp.asarray(a, f32)
        return jnp.pad(a, ((0, rows - a.shape[0]), (0, 128 - a.shape[1])))

    slab = jnp.concatenate([
        vec_rows,                                   # rows   0:8
        blk(wn_aug, _NR_WN),                        # rows   8:24
        blk(a_c_blk, _NR_AC),                       # rows  24:56
        blk(we1_blk, _NR_WE1),                      # rows  56:120
        blk(we2_blk, _NR_WE2),                      # rows 120:248
        blk(m_avg, _NR_MAVG),                       # rows 248:312
        blk(a_edge_dup, _NR_AEDGE),                 # rows 312:376
        blk(wo_wide, _NR_WO),                       # rows 376:408
        blk(p["wr"], _NR_WR),                       # rows 408:424
    ], axis=0)
    assert slab.shape == (_SLAB_ROWS, 128)
    return slab


def gat_layer(node, edge, adj, params):
    assert node.shape == (B, N, F_IN) and edge.shape == (B, N, N, E)

    # boundary reshapes / mask prep (plain JAX glue, runs under jit)
    node2d = node.reshape(GN, F_IN).astype(jnp.float32)
    edge2d = edge.reshape(GN, N * E).astype(jnp.float32)        # lane-dense edge layout
    adjf = adj.astype(jnp.float32)
    eyeb = jnp.eye(B, dtype=jnp.float32)
    adj_full = (adjf[:, :, None, :] * eyeb[:, None, :, None]).reshape(GN, GN)
    adj_stack = jnp.tile(adj_full, (H, 1))                      # (H*GN, GN)

    slab = _pack_params(params)

    vspec = pl.BlockSpec(memory_space=pltpu.MemorySpace.VMEM)   # whole array, single step
    out_node2d, out_edge2d = pl.pallas_call(
        _gat_kernel,
        in_specs=[vspec, vspec, vspec, vspec],
        out_specs=(vspec, vspec),
        out_shape=(jax.ShapeDtypeStruct((GN, F_OUT), jnp.float32),
                   jax.ShapeDtypeStruct((GN, N * E), jnp.float32)),
    )(node2d, edge2d, adj_stack, slab)

    return (out_node2d.reshape(B, N, F_OUT),
            out_edge2d.reshape(B, N, N, E),
            adj)


def reference(node, edge, adj, p):
    """Pure-JAX mirror of the PyTorch forward (eval-mode dropout)."""
    b_, n_, _ = node.shape

    def ln(x, g, b):
        mu = x.mean(-1, keepdims=True)
        var = ((x - mu) ** 2).mean(-1, keepdims=True)
        return (x - mu) / jnp.sqrt(var + EPS) * g[0] + b[0]

    h = ln(node, p["ln1_g"], p["ln1_b"]) @ p["wn"] + p["bn"][0]
    en = ln(edge, p["ln2_g"], p["ln2_b"])
    eu = jax.nn.gelu(en @ p["we1"] + p["be1"][0], approximate=False) @ p["we2"] + p["be2"][0]
    ne = eu + edge
    hv = h.reshape(b_, n_, H, HS)
    row = jnp.broadcast_to(hv[:, :, None, :, :], (b_, n_, n_, H, HS))
    col = jnp.transpose(row, (0, 2, 1, 3, 4))
    eb = jnp.broadcast_to(ne[:, :, :, None, :], (b_, n_, n_, H, E))
    attn_in = jnp.concatenate([row, col, eb], axis=-1)                    # (B,N,N,H,2HS+E)
    logits = jnp.einsum("bnmhk,gk->bnmhg", attn_in, p["attn_a"]).sum(-1)  # (B,N,N,H)
    logits = jnp.where(adj[..., None] == 0, -jnp.inf, logits)
    logits = jnp.where(logits >= 0, logits, SLOPE * logits)
    m = jnp.max(logits, axis=2, keepdims=True)
    pe = jnp.exp(logits - m)
    coeff = pe / jnp.sum(pe, axis=2, keepdims=True)
    coeff = jnp.where(jnp.isnan(coeff), 0.0, coeff)                       # nan_to_num(0)
    out = jnp.einsum("bmhx,bnmh->bnhx", hv, coeff).reshape(b_, n_, F_OUT)
    out = out @ p["wo"] + p["bo"][0]
    res = node @ p["wr"] + p["br"][0]
    y = out + res
    y = jnp.where(y >= 0, y, SLOPE * y)
    return y, ne, adj


if __name__ == "__main__":
    key = jax.random.PRNGKey(0)
    k_node, k_edge, k_adj, k_param = jax.random.split(key, 4)
    node = jax.random.normal(k_node, (B, N, F_IN), jnp.float32)
    edge = jax.random.normal(k_edge, (B, N, N, E), jnp.float32)
    adj = (jax.random.uniform(k_adj, (B, N, N)) > 0.35).astype(jnp.float32)
    adj = adj.at[0, 0, :].set(0.0)   # fully-masked row exercises the nan_to_num(0) path
    params = init_params(k_param)

    gat = jax.jit(gat_layer)
    new_node, new_edge, adj_out = gat(node, edge, adj, params)
    jax.block_until_ready((new_node, new_edge, adj_out))

    ref_node, ref_edge, _ = reference(node, edge, adj, params)
    np.testing.assert_allclose(np.asarray(new_node), np.asarray(ref_node), rtol=1e-2, atol=1e-2)
    np.testing.assert_allclose(np.asarray(new_edge), np.asarray(ref_edge), rtol=1e-2, atol=1e-2)
    print("KERNEL_OK")
</pallas_src>

<mosaic_0001>
module attributes {stable_mosaic.version = 11 : i64} {
  func.func @_gat_kernel(%arg0: memref<16x16xf32, #tpu.memory_space<vmem>>, %arg1: memref<16x64xf32, #tpu.memory_space<vmem>>, %arg2: memref<32x16xf32, #tpu.memory_space<vmem>>, %arg3: memref<424x128xf32, #tpu.memory_space<vmem>>, %arg4: memref<16x32xf32, #tpu.memory_space<vmem>>, %arg5: memref<16x64xf32, #tpu.memory_space<vmem>>) attributes {dimension_semantics = [], scalar_prefetch = 0 : i64, scratch_operands = 0 : i64, tpu.core_type = #tpu.core_type<tc>} {
    %c0 = arith.constant 0 : index
    %c0_0 = arith.constant 0 : index
    %0 = vector.load %arg0[%c0, %c0_0] : memref<16x16xf32, #tpu.memory_space<vmem>>, vector<16x16xf32>
    %c0_1 = arith.constant 0 : index
    %c0_2 = arith.constant 0 : index
    %1 = vector.load %arg1[%c0_1, %c0_2] : memref<16x64xf32, #tpu.memory_space<vmem>>, vector<16x64xf32>
    %c0_3 = arith.constant 0 : index
    %c0_4 = arith.constant 0 : index
    %2 = vector.load %arg2[%c0_3, %c0_4] : memref<32x16xf32, #tpu.memory_space<vmem>>, vector<32x16xf32>
    %c0_5 = arith.constant 0 : index
    %c0_6 = arith.constant 0 : index
    %3 = vector.load %arg3[%c0_5, %c0_6] : memref<424x128xf32, #tpu.memory_space<vmem>>, vector<1x16xf32>
    %c1 = arith.constant 1 : index
    %c0_7 = arith.constant 0 : index
    %4 = vector.load %arg3[%c1, %c0_7] : memref<424x128xf32, #tpu.memory_space<vmem>>, vector<1x16xf32>
    %c2 = arith.constant 2 : index
    %c0_8 = arith.constant 0 : index
    %5 = vector.load %arg3[%c2, %c0_8] : memref<424x128xf32, #tpu.memory_space<vmem>>, vector<1x64xf32>
    %c3 = arith.constant 3 : index
    %c0_9 = arith.constant 0 : index
    %6 = vector.load %arg3[%c3, %c0_9] : memref<424x128xf32, #tpu.memory_space<vmem>>, vector<1x64xf32>
    %c4 = arith.constant 4 : index
    %c0_10 = arith.constant 0 : index
    %7 = vector.load %arg3[%c4, %c0_10] : memref<424x128xf32, #tpu.memory_space<vmem>>, vector<1x34xf32>
    %c5 = arith.constant 5 : index
    %c0_11 = arith.constant 0 : index
    %8 = vector.load %arg3[%c5, %c0_11] : memref<424x128xf32, #tpu.memory_space<vmem>>, vector<1x128xf32>
    %c6 = arith.constant 6 : index
    %c0_12 = arith.constant 0 : index
    %9 = vector.load %arg3[%c6, %c0_12] : memref<424x128xf32, #tpu.memory_space<vmem>>, vector<1x64xf32>
    %c7 = arith.constant 7 : index
    %c0_13 = arith.constant 0 : index
    %10 = vector.load %arg3[%c7, %c0_13] : memref<424x128xf32, #tpu.memory_space<vmem>>, vector<1x32xf32>
    %c8 = arith.constant 8 : index
    %c0_14 = arith.constant 0 : index
    %11 = vector.load %arg3[%c8, %c0_14] : memref<424x128xf32, #tpu.memory_space<vmem>>, vector<16x34xf32>
    %c24 = arith.constant 24 : index
    %c0_15 = arith.constant 0 : index
    %12 = vector.load %arg3[%c24, %c0_15] : memref<424x128xf32, #tpu.memory_space<vmem>>, vector<32x16xf32>
    %c24_16 = arith.constant 24 : index
    %c16 = arith.constant 16 : index
    %13 = vector.load %arg3[%c24_16, %c16] : memref<424x128xf32, #tpu.memory_space<vmem>>, vector<32x1xf32>
    %c56 = arith.constant 56 : index
    %c0_17 = arith.constant 0 : index
    %14 = vector.load %arg3[%c56, %c0_17] : memref<424x128xf32, #tpu.memory_space<vmem>>, vector<64x128xf32>
    %c120 = arith.constant 120 : index
    %c0_18 = arith.constant 0 : index
    %15 = vector.load %arg3[%c120, %c0_18] : memref<424x128xf32, #tpu.memory_space<vmem>>, vector<128x64xf32>
    %c248 = arith.constant 248 : index
    %c0_19 = arith.constant 0 : index
    %16 = vector.load %arg3[%c248, %c0_19] : memref<424x128xf32, #tpu.memory_space<vmem>>, vector<64x64xf32>
    %c312 = arith.constant 312 : index
    %c0_20 = arith.constant 0 : index
    %17 = vector.load %arg3[%c312, %c0_20] : memref<424x128xf32, #tpu.memory_space<vmem>>, vector<64x16xf32>
    %c376 = arith.constant 376 : index
    %c0_21 = arith.constant 0 : index
    %18 = vector.load %arg3[%c376, %c0_21] : memref<424x128xf32, #tpu.memory_space<vmem>>, vector<32x64xf32>
    %c408 = arith.constant 408 : index
    %c0_22 = arith.constant 0 : index
    %19 = vector.load %arg3[%c408, %c0_22] : memref<424x128xf32, #tpu.memory_space<vmem>>, vector<16x32xf32>
    %cst = arith.constant dense<0.000000e+00> : vector<16xf32>
    %20 = vector.multi_reduction <add>, %0, %cst [1] : vector<16x16xf32> to vector<16xf32>
    %21 = vector.shape_cast %20 : vector<16xf32> to vector<16x1xf32>
    %cst_23 = arith.constant 1.600000e+01 : f32
    %22 = vector.broadcast %cst_23 : f32 to vector<16x1xf32>
    %23 = arith.divf %21, %22 : vector<16x1xf32>
    %24 = vector.broadcast %23 : vector<16x1xf32> to vector<16x16xf32>
    %25 = arith.subf %0, %24 : vector<16x16xf32>
    %26 = arith.mulf %25, %25 : vector<16x16xf32>
    %cst_24 = arith.constant dense<0.000000e+00> : vector<16xf32>
    %27 = vector.multi_reduction <add>, %26, %cst_24 [1] : vector<16x16xf32> to vector<16xf32>
    %28 = vector.shape_cast %27 : vector<16xf32> to vector<16x1xf32>
    %cst_25 = arith.constant 1.600000e+01 : f32
    %29 = vector.broadcast %cst_25 : f32 to vector<16x1xf32>
    %30 = arith.divf %28, %29 : vector<16x1xf32>
    %31 = vector.broadcast %23 : vector<16x1xf32> to vector<16x16xf32>
    %32 = arith.subf %0, %31 : vector<16x16xf32>
    %cst_26 = arith.constant 9.99999974E-6 : f32
    %33 = vector.broadcast %cst_26 : f32 to vector<16x1xf32>
    %34 = arith.addf %30, %33 : vector<16x1xf32>
    %35 = math.rsqrt %34 : vector<16x1xf32>
    %36 = vector.broadcast %35 : vector<16x1xf32> to vector<16x16xf32>
    %37 = arith.mulf %32, %36 : vector<16x16xf32>
    %38 = vector.broadcast %3 : vector<1x16xf32> to vector<16x16xf32>
    %39 = arith.mulf %37, %38 : vector<16x16xf32>
    %40 = vector.broadcast %4 : vector<1x16xf32> to vector<16x16xf32>
    %41 = arith.addf %39, %40 : vector<16x16xf32>
    %cst_27 = arith.constant dense<0.000000e+00> : vector<16x34xf32>
    %42 = tpu.matmul %41, %11, %cst_27 {dimension_numbers = #tpu.dot_dimension_numbers<[1], [0], [0], [1], [0, 0, 1, 1], [], []>} : vector<16x16xf32>, vector<16x34xf32>, vector<16x34xf32> -> vector<16x34xf32>
    %43 = vector.broadcast %7 : vector<1x34xf32> to vector<16x34xf32>
    %44 = arith.addf %42, %43 : vector<16x34xf32>
    %45 = vector.extract_strided_slice %44 {offsets = [0, 0], sizes = [16, 32], strides = [1, 1]} : vector<16x34xf32> to vector<16x32xf32>
    %46 = vector.extract_strided_slice %44 {offsets = [0, 32], sizes = [16, 2], strides = [1, 1]} : vector<16x34xf32> to vector<16x2xf32>
    %cst_28 = arith.constant dense<0.000000e+00> : vector<32x16xf32>
    %47 = tpu.matmul %12, %41, %cst_28 {dimension_numbers = #tpu.dot_dimension_numbers<[1], [1], [0], [0], [0, 0, 1, 0], [], []>} : vector<32x16xf32>, vector<16x16xf32>, vector<32x16xf32> -> vector<32x16xf32>
    %48 = vector.broadcast %13 : vector<32x1xf32> to vector<32x16xf32>
    %49 = arith.addf %47, %48 : vector<32x16xf32>
    %cst_29 = arith.constant dense<0.000000e+00> : vector<16x64xf32>
    %50 = tpu.matmul %1, %16, %cst_29 {dimension_numbers = #tpu.dot_dimension_numbers<[1], [0], [0], [1], [0, 0, 1, 1], [], []>} : vector<16x64xf32>, vector<64x64xf32>, vector<16x64xf32> -> vector<16x64xf32>
    %51 = arith.subf %1, %50 : vector<16x64xf32>
    %52 = arith.mulf %51, %51 : vector<16x64xf32>
    %cst_30 = arith.constant dense<0.000000e+00> : vector<16x64xf32>
    %53 = tpu.matmul %52, %16, %cst_30 {dimension_numbers = #tpu.dot_dimension_numbers<[1], [0], [0], [1], [0, 0, 1, 1], [], []>} : vector<16x64xf32>, vector<64x64xf32>, vector<16x64xf32> -> vector<16x64xf32>
    %cst_31 = arith.constant 9.99999974E-6 : f32
    %54 = vector.broadcast %cst_31 : f32 to vector<16x64xf32>
    %55 = arith.addf %53, %54 : vector<16x64xf32>
    %56 = math.rsqrt %55 : vector<16x64xf32>
    %57 = arith.mulf %51, %56 : vector<16x64xf32>
    %58 = vector.broadcast %5 : vector<1x64xf32> to vector<16x64xf32>
    %59 = arith.mulf %57, %58 : vector<16x64xf32>
    %60 = vector.broadcast %6 : vector<1x64xf32> to vector<16x64xf32>
    %61 = arith.addf %59, %60 : vector<16x64xf32>
    %cst_32 = arith.constant dense<0.000000e+00> : vector<16x128xf32>
    %62 = tpu.matmul %61, %14, %cst_32 {dimension_numbers = #tpu.dot_dimension_numbers<[1], [0], [0], [1], [0, 0, 1, 1], [], []>} : vector<16x64xf32>, vector<64x128xf32>, vector<16x128xf32> -> vector<16x128xf32>
    %63 = vector.broadcast %8 : vector<1x128xf32> to vector<16x128xf32>
    %64 = arith.addf %62, %63 : vector<16x128xf32>
    %cst_33 = arith.constant 5.000000e-01 : f32
    %65 = vector.broadcast %cst_33 : f32 to vector<16x128xf32>
    %66 = arith.mulf %65, %64 : vector<16x128xf32>
    %cst_34 = arith.constant 4.471500e-02 : f32
    %67 = vector.broadcast %cst_34 : f32 to vector<16x128xf32>
    %68 = arith.mulf %67, %64 : vector<16x128xf32>
    %69 = arith.mulf %68, %64 : vector<16x128xf32>
    %70 = arith.mulf %69, %64 : vector<16x128xf32>
    %71 = arith.addf %64, %70 : vector<16x128xf32>
    %cst_35 = arith.constant 0.797884583 : f32
    %72 = vector.broadcast %cst_35 : f32 to vector<16x128xf32>
    %73 = arith.mulf %72, %71 : vector<16x128xf32>
    %74 = math.tanh %73 : vector<16x128xf32>
    %cst_36 = arith.constant 1.000000e+00 : f32
    %75 = vector.broadcast %cst_36 : f32 to vector<16x128xf32>
    %76 = arith.addf %75, %74 : vector<16x128xf32>
    %77 = arith.mulf %66, %76 : vector<16x128xf32>
    %cst_37 = arith.constant dense<0.000000e+00> : vector<16x64xf32>
    %78 = tpu.matmul %77, %15, %cst_37 {dimension_numbers = #tpu.dot_dimension_numbers<[1], [0], [0], [1], [0, 0, 1, 1], [], []>} : vector<16x128xf32>, vector<128x64xf32>, vector<16x64xf32> -> vector<16x64xf32>
    %79 = vector.broadcast %9 : vector<1x64xf32> to vector<16x64xf32>
    %80 = arith.addf %78, %79 : vector<16x64xf32>
    %81 = arith.addf %80, %1 : vector<16x64xf32>
    %c0_38 = arith.constant 0 : index
    %c0_39 = arith.constant 0 : index
    %82 = vector.load %arg5[%c0_38, %c0_39] : memref<16x64xf32, #tpu.memory_space<vmem>>, vector<16x64xf32>
    tpu.vector_store %arg5[%c0_38, %c0_39], %81 {strides = array<i32>} : memref<16x64xf32, #tpu.memory_space<vmem>>, vector<16x64xf32>,
    %cst_40 = arith.constant dense<0.000000e+00> : vector<16x16xf32>
    %83 = tpu.matmul %81, %17, %cst_40 {dimension_numbers = #tpu.dot_dimension_numbers<[1], [0], [0], [1], [0, 0, 1, 1], [], []>} : vector<16x64xf32>, vector<64x16xf32>, vector<16x16xf32> -> vector<16x16xf32>
    %84 = tpu.concatenate %83, %83 in 0 : vector<16x16xf32>, vector<16x16xf32> -> vector<32x16xf32>
    %85 = vector.extract_strided_slice %46 {offsets = [0, 0], sizes = [16, 1], strides = [1, 1]} : vector<16x2xf32> to vector<16x1xf32>
    %86 = vector.extract_strided_slice %46 {offsets = [0, 1], sizes = [16, 1], strides = [1, 1]} : vector<16x2xf32> to vector<16x1xf32>
    %87 = tpu.concatenate %85, %86 in 0 : vector<16x1xf32>, vector<16x1xf32> -> vector<32x1xf32>
    %88 = vector.broadcast %87 : vector<32x1xf32> to vector<32x16xf32>
    %89 = arith.addf %88, %49 : vector<32x16xf32>
    %90 = arith.addf %89, %84 : vector<32x16xf32>
    %cst_41 = arith.constant 0.000000e+00 : f32
    %91 = vector.broadcast %cst_41 : f32 to vector<32x16xf32>
    %92 = arith.cmpf oge, %90, %91 : vector<32x16xf32>
    %cst_42 = arith.constant 2.000000e-01 : f32
    %93 = vector.broadcast %cst_42 : f32 to vector<32x16xf32>
    %94 = arith.mulf %93, %90 : vector<32x16xf32>
    %95 = arith.select %92, %90, %94 : vector<32x16xi1>, vector<32x16xf32>
    %cst_43 = arith.constant 0.000000e+00 : f32
    %96 = vector.broadcast %cst_43 : f32 to vector<32x16xf32>
    %97 = arith.cmpf one, %2, %96 : vector<32x16xf32>
    %cst_44 = arith.constant -1.000000e+30 : f32
    %98 = vector.broadcast %cst_44 : f32 to vector<32x16xf32>
    %99 = arith.select %97, %95, %98 : vector<32x16xi1>, vector<32x16xf32>
    %cst_45 = arith.constant dense<0xFF800000> : vector<32xf32>
    %100 = vector.multi_reduction <maximumf>, %99, %cst_45 [1] : vector<32x16xf32> to vector<32xf32>
    %101 = vector.shape_cast %100 : vector<32xf32> to vector<32x1xf32>
    %102 = vector.broadcast %101 : vector<32x1xf32> to vector<32x16xf32>
    %103 = arith.subf %99, %102 : vector<32x16xf32>
    %104 = math.exp %103 : vector<32x16xf32>
    %cst_46 = arith.constant 0.000000e+00 : f32
    %105 = vector.broadcast %cst_46 : f32 to vector<32x16xf32>
    %106 = arith.select %97, %104, %105 : vector<32x16xi1>, vector<32x16xf32>
    %cst_47 = arith.constant dense<0.000000e+00> : vector<32xf32>
    %107 = vector.multi_reduction <add>, %106, %cst_47 [1] : vector<32x16xf32> to vector<32xf32>
    %108 = vector.shape_cast %107 : vector<32xf32> to vector<32x1xf32>
    %cst_48 = arith.constant 1.000000e-30 : f32
    %109 = vector.broadcast %cst_48 : f32 to vector<32x1xf32>
    %110 = arith.maximumf %108, %109 : vector<32x1xf32>
    %111 = tpu.reciprocal %110 {approx = true} : vector<32x1xf32> -> vector<32x1xf32>
    %cst_49 = arith.constant 0.000000e+00 : f32
    %112 = vector.broadcast %cst_49 : f32 to vector<32x1xf32>
    %113 = arith.cmpf ogt, %108, %112 : vector<32x1xf32>
    %114 = vector.broadcast %111 : vector<32x1xf32> to vector<32x16xf32>
    %115 = arith.mulf %106, %114 : vector<32x16xf32>
    %cst_50 = arith.constant 0.000000e+00 : f32
    %116 = vector.shape_cast %113 : vector<32x1xi1> to vector<32x1xi1>
    %117 = vector.broadcast %116 : vector<32x1xi1> to vector<32x16xi1>
    %118 = vector.broadcast %cst_50 : f32 to vector<32x16xf32>
    %119 = arith.select %117, %115, %118 : vector<32x16xi1>, vector<32x16xf32>
    %cst_51 = arith.constant dense<0.000000e+00> : vector<16x64xf32>
    %120 = tpu.matmul %45, %18, %cst_51 {dimension_numbers = #tpu.dot_dimension_numbers<[1], [0], [0], [1], [0, 0, 1, 1], [], []>} : vector<16x32xf32>, vector<32x64xf32>, vector<16x64xf32> -> vector<16x64xf32>
    %cst_52 = arith.constant dense<0.000000e+00> : vector<16x32xf32>
    %121 = tpu.matmul %0, %19, %cst_52 {dimension_numbers = #tpu.dot_dimension_numbers<[1], [0], [0], [1], [0, 0, 1, 1], [], []>} : vector<16x16xf32>, vector<16x32xf32>, vector<16x32xf32> -> vector<16x32xf32>
    %122 = vector.broadcast %10 : vector<1x32xf32> to vector<16x32xf32>
    %123 = arith.addf %121, %122 : vector<16x32xf32>
    %124 = vector.extract_strided_slice %119 {offsets = [0, 0], sizes = [16, 16], strides = [1, 1]} : vector<32x16xf32> to vector<16x16xf32>
    %125 = vector.extract_strided_slice %120 {offsets = [0, 0], sizes = [16, 32], strides = [1, 1]} : vector<16x64xf32> to vector<16x32xf32>
    %cst_53 = arith.constant dense<0.000000e+00> : vector<16x32xf32>
    %126 = tpu.matmul %124, %125, %cst_53 {dimension_numbers = #tpu.dot_dimension_numbers<[1], [0], [0], [1], [0, 0, 1, 1], [], []>} : vector<16x16xf32>, vector<16x32xf32>, vector<16x32xf32> -> vector<16x32xf32>
    %127 = arith.addf %123, %126 : vector<16x32xf32>
    %128 = vector.extract_strided_slice %119 {offsets = [16, 0], sizes = [16, 16], strides = [1, 1]} : vector<32x16xf32> to vector<16x16xf32>
    %129 = vector.extract_strided_slice %120 {offsets = [0, 32], sizes = [16, 32], strides = [1, 1]} : vector<16x64xf32> to vector<16x32xf32>
    %cst_54 = arith.constant dense<0.000000e+00> : vector<16x32xf32>
    %130 = tpu.matmul %128, %129, %cst_54 {dimension_numbers = #tpu.dot_dimension_numbers<[1], [0], [0], [1], [0, 0, 1, 1], [], []>} : vector<16x16xf32>, vector<16x32xf32>, vector<16x32xf32> -> vector<16x32xf32>
    %131 = arith.addf %127, %130 : vector<16x32xf32>
    %cst_55 = arith.constant 0.000000e+00 : f32
    %132 = vector.broadcast %cst_55 : f32 to vector<16x32xf32>
    %133 = arith.cmpf oge, %131, %132 : vector<16x32xf32>
    %cst_56 = arith.constant 2.000000e-01 : f32
    %134 = vector.broadcast %cst_56 : f32 to vector<16x32xf32>
    %135 = arith.mulf %134, %131 : vector<16x32xf32>
    %136 = arith.select %133, %131, %135 : vector<16x32xi1>, vector<16x32xf32>
    %c0_57 = arith.constant 0 : index
    %c0_58 = arith.constant 0 : index
    %137 = vector.load %arg4[%c0_57, %c0_58] : memref<16x32xf32, #tpu.memory_space<vmem>>, vector<16x32xf32>
    tpu.vector_store %arg4[%c0_57, %c0_58], %136 {strides = array<i32>} : memref<16x32xf32, #tpu.memory_space<vmem>>, vector<16x32xf32>,
    return
  }
}

</mosaic_0001>

<bundles_post_ra>
// kernel: tile.36
= control target key start
LH: loop header
LB: loop body
LE: loop exit
PB: predicated region body
PF: predicated region fallthrough
CT: control target
= control target key end

     0   :  { %s22_s0 = inlined_call_operand.vmem [shape: f32[8], index: 0, kind: input, shape index: {}]   ;;  %s23_s1 = inlined_call_operand.vmem [shape: f32[8,8], index: 1, kind: output, shape index: {}]  }
   0x1   :  { %v4_v0 = vld [vmem:[%s22_s0] ss:$0 sm:$0xff] }
   0x2   :  { %5 = vst [vmem:[%s23_s1] sm:$0xff] %v4_v0 }

// kernel: tile.44
= control target key start
LH: loop header
LB: loop body
LE: loop exit
PB: predicated region body
PF: predicated region fallthrough
CT: control target
= control target key end

     0   :  { %s22_s0 = inlined_call_operand.vmem [shape: f32[16], index: 0, kind: input, shape index: {}]   ;;  %s23_s1 = inlined_call_operand.vmem [shape: f32[8,16], index: 1, kind: output, shape index: {}]  }
   0x1   :  { %v4_v0 = vld [vmem:[%s22_s0] ss:$0 sm:$0xff] }
   0x2   :  { %5 = vst [vmem:[%s23_s1] sm:$0xff] %v4_v0 }

// kernel: gat_layer.1
= control target key start
LH: loop header
LB: loop body
LE: loop exit
PB: predicated region body
PF: predicated region fallthrough
CT: control target
= control target key end

     0   :  { %vm88_vm0 = vcmask 130048   ;;  %s2100_s0 = inlined_call_operand.vmem [shape: f32[16,16], index: 0, kind: input, shape index: {}]   ;;  %s2101_s1 = inlined_call_operand.vmem [shape: f32[16,64], index: 1, kind: input, shape index: {}]   ;;  %s2102_s2 = inlined_call_operand.vmem [shape: f32[32,16], index: 2, kind: input, shape index: {}]   ;;  %s2103_s3 = inlined_call_operand.vmem [shape: f32[424,128], index: 3, kind: input, shape index: {}]   ;;  %s2104_s4 = inlined_call_operand.hbm [shape: f32[16,32], index: 4, kind: output, shape index: {0}]   ;;  %s2105_s5 = inlined_call_operand.vmem [shape: f32[16,64], index: 5, kind: output, shape index: {1}]  }
   0x1   :  { %v1782_v0 = vld [vmem:[%s2100_s0] sm:$0xff]  ;;  %v1787_v1 = vld [vmem:[%s2100_s0 + $0x8] sm:$0xff] }
   0x2   :  { %11 = vsyncpa [#allocation3], 0  ;;  %v89_v2 = vsel %vm88_vm0, %v1782_v0, 0.0  ;;  %v92_v3 = vsel %vm88_vm0, %v1787_v1, 0.0  ;;  %v36_v14 = vld [vmem:[%s2103_s3 + $0x8] sm:$0xff]  ;;  %v37_v15 = vld [vmem:[%s2103_s3 + $0x10] sm:$0xff] }
   0x3   :  { %90 = vadd.xlane.f32.xlu0 %v89_v2  ;;  %v1539_v16 = vpack.c.bf16 %v37_v15, %v36_v14  ;;  %v66_v17 = vld [vmem:[%s2103_s3 + $0xf8] sm:$0xff]  ;;  %v67_v18 = vld [vmem:[%s2103_s3 + $0x100] sm:$0xff]  ;;  %v68_v35 = vld [vmem:[%s2103_s3 + $0x108] sm:$0xff]  ;;  %vm326_vm1 = vcmask 523264   ;;  %v1742_v50 = vmov 16   ;;  %v1743_v51 = vmov 32  }
   0x4   :  { %v1549_v19 = vpack.c.bf16 %v67_v18, %v66_v17  ;;  %v1812_v20 = vld [vmem:[%s2103_s3 + $0x18] sm:$0xff]  ;;  %v1261_v28 = vld [vmem:[%s2103_s3] ss:$0 sm:$0xff]  ;;  %v1262_v30 = vld [vmem:[%s2103_s3 + $0x1] ss:$0 sm:$0xff]  ;;  %1678 = vset.pattern.permute.xlu1 %v1742_v50  ;;  %1681 = vset.pattern.permute.xlu0 %v1743_v51  ;;  %s1744_s7 = smov 127  }
   0x5   :  { %1540 = vmatprep.subr.bf16.mxu0 %v1539_v16  ;;  %1390 = vmatprep.mubr.msk.f32.mxu1 %vm88_vm0, %v1812_v20  ;;  %v69_v36 = vld [vmem:[%s2103_s3 + $0x110] sm:$0xff]  ;;  %v1832_v40 = vld [vmem:[%s2101_s1] sm:$0xff]  ;;  %vm1544_vm2 = vmpackc.low %vm88_vm0, %vm88_vm0  ;;  %vm894_vm3 = vcmask 261120   ;;  %s1746_s23 = smov [#allocation2]  }
   0x6   :  { %1542 = vmatpush3.bf16.msra.mxu0 %v1539_v16  ;;  %v1553_v39 = vpack.c.bf16 %v69_v36, %v68_v35  ;;  %v70_v41 = vld [vmem:[%s2103_s3 + $0x118] sm:$0xff]  ;;  %v71_v42 = vld [vmem:[%s2103_s3 + $0x120] sm:$0xff]  ;;  %v72_v45 = vld [vmem:[%s2103_s3 + $0x128] sm:$0xff]  ;;  %s1246_s24 = sshll.u32 %s1746_s23, 4  ;;  %s1247_s24 = int_to_ptr.vmem [resolvable:$true] %s1246_s24 }
   0x7   :  { %93 = vadd.xlane.f32.xlu0 %v92_v3  ;;  %1550 = vmatprep.subr.bf16.mxu0 %v1549_v19  ;;  %v1557_v44 = vpack.c.bf16 %v71_v42, %v70_v41  ;;  %v73_v46 = vld [vmem:[%s2103_s3 + $0x130] sm:$0xff]  ;;  %v39_v48 = vld [vmem:[%s2103_s3 + $0x20] sm:$0xff]  ;;  %v1858_v49 = vld [vmem:[%s2101_s1 + $0x8] sm:$0xff]  ;;  %p1723_p1 = scmp.lt.s32.totalorder %s1247_s24, %s1247_s24 }
   0x8   :  { %v1561_v47 = vpack.c.bf16 %v73_v46, %v72_v45  ;;  %v40_v52 = vld [vmem:[%s2103_s3 + $0x28] sm:$0xff]  ;;  %v41_v53 = vld [vmem:[%s2103_s3 + $0x30] sm:$0xff]  ;;  %v1263_v54 = vld [vmem:[%s2103_s3 + $0x4] ss:$0 sm:$0xff] }
   0x9   :  { %v47_v14 = vld [vmem:[%s2103_s3 + $0x60] sm:$0xff]  ;;  %v48_v17 = vld [vmem:[%s2103_s3 + $0x68] sm:$0xff]  ;;  %v49_v18 = vld [vmem:[%s2103_s3 + $0x70] sm:$0xff] }
   0xa   :  { %v54_v42 = vld [vmem:[%s2103_s3 + $0x98] sm:$0xff]  ;;  %v56_v45 = vld [vmem:[%s2103_s3 + $0xa8] sm:$0xff]  ;;  %v57_v46 = vld [vmem:[%s2103_s3 + $0xb0] sm:$0xff] }
  0x90   :  { %v91_v4 = vpop.xlane.xlu0 %90 }
  0x91   :  { %v96_v5 = vmul.f32 0.0625, %v91_v4 }
  0x93   :  { %v98_v6 = vsub.f32 %v1782_v0, %v96_v5 }
  0x94   :  { %v94_v7 = vpop.xlane.xlu0 %93 }
  0x95   :  { %v97_v8 = vmul.f32 0.0625, %v94_v7  ;;  %v100_v9 = vmul.f32 %v98_v6, %v98_v6  ;;  %v42_v7 = vld [vmem:[%s2103_s3 + $0x38] sm:$0xff] }
  0x97   :  { %v99_v10 = vsub.f32 %v1787_v1, %v97_v8  ;;  %v102_v11 = vsel %vm88_vm0, %v100_v9, 0.0  ;;  %v43_v8 = vld [vmem:[%s2103_s3 + $0x40] sm:$0xff] }
  0x98   :  { %103 = vadd.xlane.f32.xlu1 %v102_v11  ;;  %v1581_v9 = vpack.c.bf16 %v43_v8, %v42_v7  ;;  %v45_v11 = vld [vmem:[%s2103_s3 + $0x50] sm:$0xff]  ;;  %v76_v7 = vld [vmem:[%s2103_s3 + $0x148] sm:$0xff] }
  0x99   :  { %v101_v12 = vmul.f32 %v99_v10, %v99_v10 }
  0x9b   :  { %v105_v13 = vsel %vm88_vm0, %v101_v12, 0.0 }
  0x9c   :  { %106 = vadd.xlane.f32.xlu1 %v105_v13  ;;  %v46_v13 = vld [vmem:[%s2103_s3 + $0x58] sm:$0xff] }
  0x9d   :  { %v1589_v16 = vpack.c.bf16 %v47_v14, %v46_v13  ;;  %v1278_v14 = vld [vmem:[%s2103_s3 + $0x5] ss:$0 sm:$0xff] }
 0x125   :  { %v104_v21 = vpop.xlane.xlu1 %103 }
 0x126   :  { %v108_v22 = vmul.f32 0.0625, %v104_v21  ;;  %v50_v21 = vld [vmem:[%s2103_s3 + $0x78] sm:$0xff] }
 0x128   :  { %v110_v23 = vadd.f32 1e-05, %v108_v22  ;;  %v51_v22 = vld [vmem:[%s2103_s3 + $0x80] sm:$0xff] }
 0x129   :  { %v107_v24 = vpop.xlane.xlu1 %106 }
 0x12a   :  { %1690 = vrsqrt.f32 %v110_v23  ;;  %v109_v25 = vmul.f32 0.0625, %v107_v24  ;;  %v1597_v23 = vpack.c.bf16 %v51_v22, %v50_v21 }
 0x12c   :  { %v111_v26 = vadd.f32 1e-05, %v109_v25 }
 0x12e   :  { %1692 = vrsqrt.f32 %v111_v26 }
 0x134   :  { %v1691_v27 = vpop.eup %1690 }
 0x135   :  { %v114_v29 = vmul.f32 %v1691_v27, %v98_v6 }
 0x137   :  { %v120_v31 = vmul.f32 %v1261_v28, %v114_v29  ;;  %v1276_v29 = vld [vmem:[%s2103_s3 + $0x2] ss:$0 sm:$0xff] }
 0x138   :  { %v1693_v32 = vpop.eup %1692 }
 0x139   :  { %v115_v33 = vmul.f32 %v1693_v32, %v99_v10  ;;  %v126_v34 = vadd.f32 %v1262_v30, %v120_v31  ;;  %v44_v10 = vld [vmem:[%s2103_s3 + $0x48] sm:$0xff] }
 0x13a   :  { %v1585_v12 = vpack.c.bf16 %v45_v11, %v44_v10  ;;  %v78_v11 = vld [vmem:[%s2103_s3 + $0x158] sm:$0xff] }
 0x13b   :  { %v121_v37 = vmul.f32 %v1261_v28, %v115_v33  ;;  %1383 = vmatprep.mubr.msk.f32.mxu0 %vm88_vm0, %v126_v34  ;;  %v1277_v33 = vld [vmem:[%s2103_s3 + $0x3] ss:$0 sm:$0xff] }
 0x13d   :  { %v127_v38 = vadd.f32 %v1262_v30, %v121_v37 }
 0x13f   :  { %1384 = vmatmul.mubr.msk.f32.vlgmr.msra.gmra.mrb[0].mxu0 %vm88_vm0, %v127_v38  ;;  %v1543_v43 = vpack.c.bf16 %v127_v38, %v126_v34  ;;  %v52_v38 = vld [vmem:[%s2103_s3 + $0x88] sm:$0xff] }
 0x140   :  { %1552 = vmatpush3.bf16.msra.mxu0 %v1549_v19  ;;  %1412 = vmatprep.mubr.msk.f32.mxu0 %vm326_vm1, %v1832_v40 }
 0x141   :  { %1545 = vmatprep.subr.msk.bf16.mxu1 %vm1544_vm2, %v1543_v43  ;;  %1554 = vmatprep.subr.bf16.mxu0 %v1553_v39 }
 0x142   :  { %1548 = vmatpush3.bf16.xpose.msk.msra.mxu1 %vm1544_vm2, %v1543_v43  ;;  %v55_v43 = vld [vmem:[%s2103_s3 + $0xa0] sm:$0xff] }
 0x143   :  { %1566 = vmatprep.subr.bf16.mxu1 %v1549_v19 }
 0x144   :  { %1556 = vmatpush3.bf16.msra.mxu0 %v1553_v39 }
 0x145   :  { %1558 = vmatprep.subr.bf16.mxu0 %v1557_v44 }
 0x148   :  { %1560 = vmatpush3.bf16.msra.mxu0 %v1557_v44 }
 0x149   :  { %1562 = vmatprep.subr.bf16.mxu0 %v1561_v47  ;;  %1391 = vmatmul.mubr.msk.f32.vlgmr.msra.gmra.mrb[0].mxu1 %vm88_vm0, %v39_v48 }
 0x14a   :  { %1568 = vmatpush3.bf16.msra.mxu1 %v1549_v19  ;;  %1393 = vmatprep.mubr.msk.f32.mxu1 %vm88_vm0, %v40_v52 }
 0x14b   :  { %1570 = vmatprep.subr.bf16.mxu1 %v1553_v39 }
 0x14c   :  { %1564 = vmatpush3.bf16.msra.mxu0 %v1561_v47 }
 0x14d   :  { %1394 = vmatmul.mubr.msk.f32.gmra.mrb[2].mxu1 %vm88_vm0, %v41_v53  ;;  %1582 = vmatprep.subr.bf16.mxu0 %v1581_v9 }
 0x14e   :  { %1572 = vmatpush3.bf16.msra.mxu1 %v1553_v39  ;;  %v53_v39 = vld [vmem:[%s2103_s3 + $0x90] sm:$0xff] }
 0x14f   :  { %1413 = vmatmul.mubr.msk.f32.vlgmr.msra.gmra.mrb[2].mxu0 %vm326_vm1, %v1858_v49  ;;  %1574 = vmatprep.subr.bf16.mxu1 %v1557_v44  ;;  %v1601_v41 = vpack.c.bf16 %v53_v39, %v52_v38  ;;  %v81_v38 = vld [vmem:[%s2103_s3 + $0x170] sm:$0xff] }
 0x150   :  { %1584 = vmatpush3.bf16.msra.mxu0 %v1581_v9  ;;  %v77_v9 = vld [vmem:[%s2103_s3 + $0x150] sm:$0xff] }
 0x151   :  { %1586 = vmatprep.subr.bf16.mxu0 %v1585_v12  ;;  %v1633_v10 = vpack.c.bf16 %v77_v9, %v76_v7 }
 0x152   :  { %1576 = vmatpush3.bf16.msra.mxu1 %v1557_v44  ;;  %v1605_v44 = vpack.c.bf16 %v55_v43, %v54_v42  ;;  %v83_v42 = vld [vmem:[%s2103_s3 + $0x180] sm:$0xff] }
 0x153   :  { %1578 = vmatprep.subr.bf16.mxu1 %v1561_v47 }
 0x154   :  { %1588 = vmatpush3.bf16.msra.mxu0 %v1585_v12  ;;  %v79_v12 = vld [vmem:[%s2103_s3 + $0x160] sm:$0xff] }
 0x155   :  { %1590 = vmatprep.subr.bf16.mxu0 %v1589_v16  ;;  %v1637_v13 = vpack.c.bf16 %v79_v12, %v78_v11  ;;  %v25_v11 = vld [vmem:[%s2102_s2 + $0x8] sm:$0xff] }
 0x156   :  { %1580 = vmatpush3.bf16.msra.mxu1 %v1561_v47  ;;  %v1609_v47 = vpack.c.bf16 %v57_v46, %v56_v45  ;;  %vm819_vm5 = vcmp.ne.f32.partialorder %v25_v11, 0.0 }
 0x157   :  { %1598 = vmatprep.subr.bf16.mxu1 %v1597_v23 }
 0x158   :  { %1592 = vmatpush3.bf16.msra.mxu0 %v1589_v16 }
 0x212   :  { %v1385_v55 = vpop.f32.mrb[0].mxu0 }
 0x213   :  { %v1873_v56 = vadd.f32 %v1385_v55, %v1263_v54  ;;  %v204_v57 = vpop.f32.mrb[1].mxu0  ;;  %v62_v55 = vld [vmem:[%s2103_s3 + $0xd8] sm:$0xff] }
 0x214   :  { %v1875_v58 = vadd.f32 %v1263_v54, %v204_v57  ;;  %v63_v57 = vld [vmem:[%s2103_s3 + $0xe0] sm:$0xff] }
 0x215   :  { %780 = vrot.lane.b32.xlu1 %v1873_v56, %s1744_s7 }
 0x216   :  { %778 = vrot.lane.b32.xlu0 %v1875_v58, %s1744_s7 }
 0x219   :  { %215 = vperm.xlu1 %1678, %v1812_v20   ;;  %v1593_v20 = vpack.c.bf16 %v49_v18, %v48_v17 }
 0x21a   :  { %783 = vperm.xlu0 %1681, %v1875_v58  }
 0x21b   :  { %1594 = vmatprep.subr.bf16.mxu0 %v1593_v20 }
 0x21c   :  { %v1881_v59 = vpop.f32.mrb[0].mxu1  ;;  %1596 = vmatpush3.bf16.msra.mxu0 %v1593_v20 }
 0x21d   :  { %220 = vperm.xlu1 %1678, %v39_v48   ;;  %v1883_v60 = vpop.f32.mrb[1].mxu1  ;;  %v58_v48 = vld [vmem:[%s2103_s3 + $0xb8] sm:$0xff] }
 0x21e   :  { %1682 = vset.pattern.permute.xlu0 %v1742_v50 }
 0x21f   :  { %230 = vperm.xlu0 %1682, %v41_v53   ;;  %v61_v53 = vld [vmem:[%s2103_s3 + $0xd0] sm:$0xff] }
 0x220   :  { %v1890_v5 = vpop.f32.mrb[2].mxu1 }
 0x221   :  { %1679 = vset.pattern.permute.xlu1 %v1743_v51  ;;  %v1892_v6 = vpop.f32.mrb[3].mxu1 }
 0x222   :  { %v1414_v61 = vpop.f32.mrb[2].mxu0  ;;  %787 = vperm.xlu1 %1679, %v1873_v56  }
 0x223   :  { %v409_v62 = vsub.f32 %v1858_v49, %v1414_v61  ;;  %v399_v63 = vpop.f32.mrb[3].mxu0  ;;  %1689 = vset.pattern.permute.xlu0 %v1743_v51  ;;  %v1621_v61 = vpack.c.bf16 %v63_v57, %v62_v55 }
 0x224   :  { %v408_v2 = vsub.f32 %v1832_v40, %v399_v63  ;;  %v65_v63 = vld [vmem:[%s2103_s3 + $0xf0] sm:$0xff] }
 0x225   :  { %v411_v4 = vmul.f32 %v409_v62, %v409_v62 }
 0x226   :  { %v410_v3 = vmul.f32 %v408_v2, %v408_v2  ;;  %1680 = vset.pattern.permute.xlu1 %v1742_v50  ;;  %v59_v50 = vld [vmem:[%s2103_s3 + $0xc0] sm:$0xff] }
 0x227   :  { %225 = vperm.xlu1 %1680, %v40_v52   ;;  %v1613_v52 = vpack.c.bf16 %v59_v50, %v58_v48  ;;  %v84_v50 = vld [vmem:[%s2103_s3 + $0x188] sm:$0xff] }
 0x228   :  { %1431 = vmatprep.mubr.msk.f32.mxu1 %vm326_vm1, %v410_v3  ;;  %v74_v3 = vld [vmem:[%s2103_s3 + $0x138] sm:$0xff] }
 0x229   :  { %1432 = vmatmul.mubr.msk.f32.vlgmr.msra.gmra.mrb[4].mxu1 %vm326_vm1, %v411_v4  ;;  %v75_v4 = vld [vmem:[%s2103_s3 + $0x140] sm:$0xff] }
 0x22a   :  { %1600 = vmatpush3.bf16.msra.mxu1 %v1597_v23  ;;  %v1629_v8 = vpack.c.bf16 %v75_v4, %v74_v3 }
 0x22b   :  { %1683 = vset.pattern.permute.xlu1 %v1743_v51  ;;  %1602 = vmatprep.subr.bf16.mxu1 %v1601_v41  ;;  %v60_v51 = vld [vmem:[%s2103_s3 + $0xc8] sm:$0xff] }
 0x22c   :  { %v1617_v54 = vpack.c.bf16 %v61_v53, %v60_v51  ;;  %1630 = vmatprep.subr.bf16.mxu0 %v1629_v8  ;;  %v85_v51 = vld [vmem:[%s2103_s3 + $0x190] sm:$0xff] }
 0x22e   :  { %1604 = vmatpush3.bf16.msra.mxu1 %v1601_v41  ;;  %v82_v41 = vld [vmem:[%s2103_s3 + $0x178] sm:$0xff] }
 0x22f   :  { %1606 = vmatprep.subr.bf16.mxu1 %v1605_v44  ;;  %v1645_v43 = vpack.c.bf16 %v83_v42, %v82_v41 }
 0x232   :  { %1608 = vmatpush3.bf16.msra.mxu1 %v1605_v44  ;;  %v1281_v44 = vld [vmem:[%s2103_s3 + $0x6] ss:$0 sm:$0xff] }
 0x233   :  { %1610 = vmatprep.subr.bf16.mxu1 %v1609_v47 }
 0x236   :  { %1612 = vmatpush3.bf16.msra.mxu1 %v1609_v47 }
 0x237   :  { %1614 = vmatprep.subr.bf16.mxu1 %v1613_v52 }
 0x23a   :  { %1616 = vmatpush3.bf16.msra.mxu1 %v1613_v52 }
 0x23b   :  { %1618 = vmatprep.subr.bf16.mxu1 %v1617_v54 }
 0x23e   :  { %1620 = vmatpush3.bf16.msra.mxu1 %v1617_v54  ;;  %v1649_v54 = vpack.c.bf16 %v85_v51, %v84_v50 }
 0x23f   :  { %1622 = vmatprep.subr.bf16.mxu1 %v1621_v61 }
 0x242   :  { %1624 = vmatpush3.bf16.msra.mxu1 %v1621_v61 }
 0x287   :  { %v781_v19 = vpop.permute.xlu1 %780 }
 0x288   :  { %v779_v15 = vpop.permute.xlu0 %778 }
 0x289   :  { %791 = vperm.xlu1 %1683, %v779_v15  }
 0x28d   :  { %795 = vperm.xlu1 %1683, %v781_v19  }
 0x299   :  { %v784_v61 = vpop.permute.xlu0 %783 }
 0x2fc   :  { %v1433_v24 = vpop.f32.mrb[4].mxu1 }
 0x2fd   :  { %v490_v25 = vadd.f32 1e-05, %v1433_v24  ;;  %v484_v26 = vpop.f32.mrb[5].mxu1 }
 0x2fe   :  { %v485_v27 = vadd.f32 1e-05, %v484_v26 }
 0x2ff   :  { %1694 = vrsqrt.f32 %v490_v25 }
 0x300   :  { %1696 = vrsqrt.f32 %v485_v27 }
 0x309   :  { %v1695_v28 = vpop.eup %1694 }
 0x30a   :  { %v1697_v30 = vpop.eup %1696  ;;  %v496_v31 = vmul.f32 %v1695_v28, %v409_v62  ;;  %v64_v62 = vld [vmem:[%s2103_s3 + $0xe8] sm:$0xff] }
 0x30b   :  { %v495_v32 = vmul.f32 %v1697_v30, %v408_v2  ;;  %v1625_v2 = vpack.c.bf16 %v65_v63, %v64_v62  ;;  %v231_v63 = vpop.permute.xlu0 %230 }
 0x30c   :  { %v502_v34 = vmul.f32 %v1276_v29, %v496_v31  ;;  %v323_v4 = vadd.f32 %v1890_v5, %v231_v63 }
 0x30d   :  { %v501_v35 = vmul.f32 %v1276_v29, %v495_v32  ;;  %1626 = vmatprep.subr.bf16.mxu1 %v1625_v2 }
 0x30e   :  { %v508_v37 = vadd.f32 %v1277_v33, %v502_v34  ;;  %1628 = vmatpush3.bf16.msra.mxu1 %v1625_v2 }
 0x30f   :  { %v507_v36 = vadd.f32 %v1277_v33, %v501_v35 }
 0x311   :  { %1450 = vmatprep.mubr.msk.f32.mxu0 %vm326_vm1, %v507_v36 }
 0x312   :  { %1451 = vmatmul.mubr.msk.f32.vlgmr.msra.gmra.mrb[4].mxu0 %vm326_vm1, %v508_v37  ;;  %v80_v37 = vld [vmem:[%s2103_s3 + $0x168] sm:$0xff] }
 0x313   :  { %1632 = vmatpush3.bf16.msra.mxu0 %v1629_v8  ;;  %v1641_v39 = vpack.c.bf16 %v81_v38, %v80_v37 }
 0x314   :  { %1634 = vmatprep.subr.bf16.mxu0 %v1633_v10 }
 0x317   :  { %1636 = vmatpush3.bf16.msra.mxu0 %v1633_v10 }
 0x318   :  { %1638 = vmatprep.subr.bf16.mxu0 %v1637_v13 }
 0x31b   :  { %1640 = vmatpush3.bf16.msra.mxu0 %v1637_v13 }
 0x31c   :  { %1642 = vmatprep.subr.bf16.mxu0 %v1641_v39 }
 0x31f   :  { %1644 = vmatpush3.bf16.msra.mxu0 %v1641_v39 }
 0x320   :  { %1646 = vmatprep.subr.bf16.mxu0 %v1645_v43 }
 0x3e5   :  { %v1452_v15 = vpop.f32.mrb[4].mxu0 }
 0x3e6   :  { %v591_v16 = vadd.f32 %v1452_v15, %v1278_v14  ;;  %v585_v17 = vpop.f32.mrb[5].mxu0 }
 0x3e7   :  { %v586_v18 = vadd.f32 %v1278_v14, %v585_v17 }
 0x3e8   :  { %v597_v19 = vmul.f32 0.044715, %v591_v16  ;;  %v595_v34 = vmul.f32 0.5, %v591_v16 }
 0x3e9   :  { %v596_v20 = vmul.f32 0.044715, %v586_v18  ;;  %v594_v32 = vmul.f32 0.5, %v586_v18 }
 0x3ea   :  { %v599_v21 = vmul.f32 %v597_v19, %v591_v16 }
 0x3eb   :  { %v598_v22 = vmul.f32 %v596_v20, %v586_v18 }
 0x3ec   :  { %v601_v23 = vmul.f32 %v599_v21, %v591_v16 }
 0x3ed   :  { %v600_v24 = vmul.f32 %v598_v22, %v586_v18 }
 0x3ee   :  { %v603_v25 = vadd.f32 %v601_v23, %v591_v16 }
 0x3ef   :  { %v602_v26 = vadd.f32 %v600_v24, %v586_v18 }
 0x3f0   :  { %v605_v27 = vmul.f32 0.7978846, %v603_v25  ;;  %v27_v25 = vld [vmem:[%s2102_s2 + $0x18] sm:$0xff] }
 0x3f1   :  { %v604_v28 = vmul.f32 0.7978846, %v602_v26  ;;  %vm821_vm11 = vcmp.ne.f32.partialorder %v27_v25, 0.0  ;;  %v1286_v25 = vld [vmem:[%s2103_s3 + $0x7] ss:$0 sm:$0xff] }
 0x3f2   :  { %1698 = vtanh.f32 %v605_v27 }
 0x3f3   :  { %1700 = vtanh.f32 %v604_v28 }
 0x3fc   :  { %v1699_v29 = vpop.eup %1698 }
 0x3fd   :  { %v1701_v30 = vpop.eup %1700  ;;  %v609_v31 = vadd.f32 1.0, %v1699_v29 }
 0x3fe   :  { %v608_v33 = vadd.f32 1.0, %v1701_v30 }
 0x3ff   :  { %v611_v36 = vmul.f32 %v609_v31, %v595_v34 }
 0x400   :  { %v610_v35 = vmul.f32 %v608_v33, %v594_v32 }
 0x402   :  { %1485 = vmatprep.mubr.f32.mxu1 %v610_v35 }
 0x403   :  { %1486 = vmatmul.mubr.f32.vlgmr.msra.gmra.mrb[6].mxu1 %v611_v36 }
 0x4d6   :  { %v1487_v45 = vpop.f32.mrb[6].mxu1 }
 0x4d7   :  { %v688_v46 = vadd.f32 %v1487_v45, %v1281_v44  ;;  %v682_v47 = vpop.f32.mrb[7].mxu1 }
 0x4d8   :  { %v683_v48 = vadd.f32 %v1281_v44, %v682_v47 }
 0x4d9   :  { %v692_v52 = vadd.f32 %v688_v46, %v1858_v49 }
 0x4da   :  { %v691_v53 = vadd.f32 %v683_v48, %v1832_v40  ;;  %v216_v40 = vpop.permute.xlu1 %215 }
 0x4db   :  { %694 = vst.msk [vmem:[%s2105_s5 + $0x8] sm:$0xff] %vm326_vm1, %v692_v52  ;;  %v308_v3 = vadd.f32 %v1883_v60, %v216_v40 }
 0x4dc   :  { %693 = vst.msk [vmem:[%s2105_s5] sm:$0xff] %vm326_vm1, %v691_v53  ;;  %1504 = vmatprep.mubr.msk.f32.mxu0 %vm326_vm1, %v691_v53 }
 0x4dd   :  { %1505 = vmatmul.mubr.msk.f32.vlgmr.msra.gmra.mrb[6].mxu0 %vm326_vm1, %v692_v52  ;;  %v798_v9 = vadd.f32 %v784_v61, %v308_v3  ;;  %v87_v3 = vld [vmem:[%s2103_s3 + $0x1a0] sm:$0xff] }
 0x4de   :  { %1648 = vmatpush3.bf16.msra.mxu0 %v1645_v43  ;;  %1515 = vmatprep.mubr.msk.f32.mxu0 %vm894_vm3, %v1875_v58  ;;  %v221_v49 = vpop.permute.xlu1 %220 }
 0x4df   :  { %1650 = vmatprep.subr.bf16.mxu0 %v1649_v54  ;;  %v313_v2 = vadd.f32 %v1881_v59, %v221_v49  ;;  %v2044_v59 = vld [vmem:[%s2102_s2] sm:$0xff] }
 0x4e0   :  { %vm818_vm6 = vcmp.ne.f32.partialorder %v2044_v59, 0.0 }
 0x4e2   :  { %1652 = vmatpush3.bf16.msra.mxu0 %v1649_v54  ;;  %v788_v55 = vpop.permute.xlu1 %787 }
 0x4e5   :  { %1516 = vmatmul.mubr.msk.f32.vlgmr.msra.gmra.mrb[8].mxu0 %vm894_vm3, %v1873_v56  ;;  %v799_v56 = vadd.f32 %v788_v55, %v313_v2  ;;  %v86_v2 = vld [vmem:[%s2103_s3 + $0x198] sm:$0xff]  ;;  %s1718_s3 = scalar_lea.vmem %s1247_s24, 256 }
 0x4e6   :  { %1522 = vmatprep.mubr.msk.f32.mxu0 %vm88_vm0, %v1782_v0  ;;  %v226_v57 = vpop.permute.xlu1 %225  ;;  %p1719_p0 = scmp.ne.s32.totalorder %s1247_s24, %s1718_s3  ;;  %p1724_p2 = scmp.lt.s32.totalorder %s1718_s3, %s1718_s3 }
 0x4e7   :  { %v318_v7 = vadd.f32 %v1892_v6, %v226_v57  ;;  %v26_v6 = vld [vmem:[%s2102_s2 + $0x10] sm:$0xff]  ;;  %s1745_s2 = smov 96  }
 0x4e8   :  { %vm820_vm9 = vcmp.ne.f32.partialorder %v26_v6, 0.0  ;;  %p1725_p3 = por %p1724_p2, %p1723_p1 }
 0x4ea   :  { %v792_v62 = vpop.permute.xlu1 %791  ;;  %p1726_p4 = pnand %p1725_p3, %p1719_p0 }
 0x4eb   :  { %v800_v0 = vadd.f32 %v792_v62, %v318_v7 }
 0x4ee   :  { %v796_v58 = vpop.permute.xlu1 %795 }
 0x4ef   :  { %v801_v8 = vadd.f32 %v796_v58, %v323_v4  ;;  %v1653_v58 = vpack.c.bf16 %v87_v3, %v86_v2 }
 0x4f1   :  { %1654 = vmatprep.subr.bf16.mxu0 %v1653_v58 }
 0x4f2   :  { %1656 = vmatpush3.bf16.msra.mxu0 %v1653_v58 }
 0x4f5   :  { %1523 = vmatmul.mubr.msk.f32.vlgmr.msra.gmra.mrb[10].mxu0 %vm88_vm0, %v1787_v1 }
 0x5b0   :  { %v1506_v10 = vpop.f32.mrb[6].mxu0 }
 0x5b1   :  { %v803_v60 = vadd.f32 %v1506_v10, %v799_v56  ;;  %v805_v12 = vadd.f32 %v1506_v10, %v801_v8  ;;  %v767_v13 = vpop.f32.mrb[7].mxu0 }
 0x5b2   :  { %v802_v5 = vadd.f32 %v798_v9, %v767_v13  ;;  %v804_v14 = vadd.f32 %v800_v0, %v767_v13 }
 0x5b3   :  { %v811_v15 = vmul.f32 0.2, %v803_v60  ;;  %vm807_vm4 = vcmp.ge.f32.partialorder %v803_v60, 0.0  ;;  %v813_v19 = vmul.f32 0.2, %v805_v12  ;;  %vm809_vm10 = vcmp.ge.f32.partialorder %v805_v12, 0.0 }
 0x5b4   :  { %v810_v16 = vmul.f32 0.2, %v802_v5  ;;  %v812_v17 = vmul.f32 0.2, %v804_v14  ;;  %vm806_vm7 = vcmp.ge.f32.partialorder %v802_v5, 0.0  ;;  %vm808_vm8 = vcmp.ge.f32.partialorder %v804_v14, 0.0 }
 0x5b5   :  { %v815_v18 = vsel %vm807_vm4, %v803_v60, %v811_v15  ;;  %v817_v32 = vsel %vm809_vm10, %v805_v12, %v813_v19 }
 0x5b6   :  { %v823_v20 = vsel %vm819_vm5, %v815_v18, -1e+30  ;;  %v814_v21 = vsel %vm806_vm7, %v802_v5, %v810_v16  ;;  %v816_v22 = vsel %vm808_vm8, %v804_v14, %v812_v17  ;;  %v825_v34 = vsel %vm821_vm11, %v817_v32, -1e+30 }
 0x5b7   :  { %v829_v23 = vsel %vm88_vm0, %v823_v20, -inf  ;;  %v822_v24 = vsel %vm818_vm6, %v814_v21, -1e+30  ;;  %v824_v29 = vsel %vm820_vm9, %v816_v22, -1e+30  ;;  %v835_v35 = vsel %vm88_vm0, %v825_v34, -inf }
 0x5b8   :  { %v1517_v26 = vpop.f32.mrb[8].mxu0  ;;  %830 = vmax.xlane.f32.xlu1 %v829_v23  ;;  %v826_v27 = vsel %vm88_vm0, %v822_v24, -inf  ;;  %v832_v33 = vsel %vm88_vm0, %v824_v29, -inf }
 0x5b9   :  { %v965_v28 = vpop.f32.mrb[9].mxu0  ;;  %827 = vmax.xlane.f32.xlu0 %v826_v27 }
 0x5ba   :  { %v1684_v30 = vpack.i.bf16 %v1517_v26, %v965_v28  ;;  %v1657_v31 = vpack.c.bf16 %v1517_v26, %v965_v28 }
 0x5bc   :  { %1658 = vmatprep.subr.bf16.mxu1 %v1657_v31 }
 0x5bd   :  { %1660 = vmatpush3.bf16.msra.mxu1 %v1657_v31  ;;  %833 = vmax.xlane.f32.xlu0 %v832_v33 }
 0x5c1   :  { %836 = vmax.xlane.f32.xlu0 %v835_v35 }
 0x5c8   :  { %v1524_v23 = vpop.f32.mrb[10].mxu0 }
 0x5c9   :  { %v1056_v26 = vadd.f32 %v1524_v23, %v1286_v25 }
 0x645   :  { %v831_v36 = vpop.xlane.xlu1 %830 }
 0x646   :  { %v839_v37 = vsub.f32 %v823_v20, %v831_v36  ;;  %v828_v38 = vpop.xlane.xlu0 %827 }
 0x647   :  { %v838_v39 = vsub.f32 %v822_v24, %v828_v38  ;;  %v1050_v24 = vpop.f32.mrb[11].mxu0 }
 0x648   :  { %v844_v41 = vmul.f32 1.442695, %v839_v37  ;;  %v1051_v27 = vadd.f32 %v1286_v25, %v1050_v24 }
 0x649   :  { %v842_v42 = vmul.f32 1.442695, %v838_v39 }
 0x64a   :  { %1702 = vpow2.f32 %v844_v41  ;;  %v834_v43 = vpop.xlane.xlu0 %833 }
 0x64b   :  { %1704 = vpow2.f32 %v842_v42  ;;  %v840_v44 = vsub.f32 %v824_v29, %v834_v43 }
 0x64d   :  { %v846_v45 = vmul.f32 1.442695, %v840_v44 }
 0x64e   :  { %v837_v46 = vpop.xlane.xlu0 %836 }
 0x64f   :  { %1706 = vpow2.f32 %v846_v45  ;;  %v841_v47 = vsub.f32 %v825_v34, %v837_v46 }
 0x651   :  { %v848_v48 = vmul.f32 1.442695, %v841_v47 }
 0x653   :  { %1708 = vpow2.f32 %v848_v48 }
 0x654   :  { %v1703_v50 = vpop.eup %1702 }
 0x655   :  { %v1705_v51 = vpop.eup %1704  ;;  %v851_v52 = vsel %vm819_vm5, %v1703_v50, 0.0 }
 0x656   :  { %v857_v53 = vsel %vm88_vm0, %v851_v52, 0.0  ;;  %v850_v54 = vsel %vm818_vm6, %v1705_v51, 0.0 }
 0x657   :  { %858 = vadd.xlane.f32.xlu1 %v857_v53  ;;  %v854_v40 = vsel %vm88_vm0, %v850_v54, 0.0 }
 0x658   :  { %855 = vadd.xlane.f32.xlu0 %v854_v40 }
 0x659   :  { %v1707_v49 = vpop.eup %1706 }
 0x65a   :  { %v852_v55 = vsel %vm820_vm9, %v1707_v49, 0.0 }
 0x65b   :  { %v860_v57 = vsel %vm88_vm0, %v852_v55, 0.0 }
 0x65c   :  { %861 = vadd.xlane.f32.xlu0 %v860_v57 }
 0x65d   :  { %v1709_v61 = vpop.eup %1708 }
 0x65e   :  { %v853_v62 = vsel %vm821_vm11, %v1709_v61, 0.0 }
 0x65f   :  { %v863_v63 = vsel %vm88_vm0, %v853_v62, 0.0 }
 0x660   :  { %864 = vadd.xlane.f32.xlu1 %v863_v63 }
 0x672   :  { %1685 = vrot.lane.b32.xlu0 %v1684_v30, %s1745_s2 }
 0x6e4   :  { %v859_v4 = vpop.xlane.xlu1 %858 }
 0x6e5   :  { %v867_v7 = vmax.f32 %v859_v4, 1e-30  ;;  %v856_v56 = vpop.xlane.xlu0 %855  ;;  %vm875_vm13 = vcmp.gt.f32.partialorder %v859_v4, 0.0 }
 0x6e6   :  { %v866_v8 = vmax.f32 %v856_v56, 1e-30  ;;  %vm874_vm12 = vcmp.gt.f32.partialorder %v856_v56, 0.0 }
 0x6e7   :  { %1710 = vrcp.f32 %v867_v7 }
 0x6e8   :  { %1712 = vrcp.f32 %v866_v8 }
 0x6e9   :  { %v862_v9 = vpop.xlane.xlu0 %861 }
 0x6ea   :  { %v868_v0 = vmax.f32 %v862_v9, 1e-30  ;;  %vm876_vm14 = vcmp.gt.f32.partialorder %v862_v9, 0.0 }
 0x6ec   :  { %1714 = vrcp.f32 %v868_v0 }
 0x6ed   :  { %v865_v10 = vpop.xlane.xlu1 %864  ;;  %v1686_v11 = vpop.permute.xlu0 %1685 }
 0x6ee   :  { %v869_v59 = vmax.f32 %v865_v10, 1e-30  ;;  %v1688_v60 = vunpack.i.h.bf16 %v1686_v11  ;;  %v1687_v12 = vunpack.i.l.bf16 %v1686_v11  ;;  %vm877_vm15 = vcmp.gt.f32.partialorder %v865_v10, 0.0 }
 0x6f0   :  { %1716 = vrcp.f32 %v869_v59  ;;  %v1661_v13 = vpack.c.bf16 %v1688_v60, %v1687_v12 }
 0x6f1   :  { %v1711_v5 = vpop.eup %1710 }
 0x6f2   :  { %v1713_v14 = vpop.eup %1712  ;;  %v879_v6 = vmul.f32 %v1711_v5, %v851_v52  ;;  %1662 = vmatprep.subr.bf16.mxu1 %v1661_v13 }
 0x6f3   :  { %v878_v1 = vmul.f32 %v1713_v14, %v850_v54 }
 0x6f4   :  { %v891_v17 = vsel %vm875_vm13, %v879_v6, 0.0 }
 0x6f5   :  { %v890_v15 = vsel %vm874_vm12, %v878_v1, 0.0 }
 0x6f6   :  { %v1715_v16 = vpop.eup %1714  ;;  %1529 = vmatprep.mubr.msk.f32.mxu1 %vm88_vm0, %v890_v15 }
 0x6f7   :  { %v880_v18 = vmul.f32 %v1715_v16, %v852_v55  ;;  %1530 = vmatmul.mubr.msk.f32.vlgmr.msra.gmra.mrb[8].mxu1 %vm88_vm0, %v891_v17 }
 0x6f8   :  { %1664 = vmatpush3.bf16.msra.mxu1 %v1661_v13 }
 0x6f9   :  { %v892_v19 = vsel %vm876_vm14, %v880_v18, 0.0 }
 0x6fa   :  { %v1717_v20 = vpop.eup %1716  ;;  %1536 = vmatprep.mubr.msk.f32.mxu1 %vm88_vm0, %v892_v19 }
 0x6fb   :  { %v881_v21 = vmul.f32 %v1717_v20, %v853_v62 }
 0x6fd   :  { %v893_v22 = vsel %vm877_vm15, %v881_v21, 0.0 }
 0x6ff   :  { %1537 = vmatmul.mubr.msk.f32.vlgmr.msra.gmra.mrb[8].mxu1 %vm88_vm0, %v893_v22 }
 0x7d2   :  { %v1538_v28 = vpop.f32.mrb[8].mxu1 }
 0x7d3   :  { %v1666_v29 = vadd.f32 %v1538_v28, %v1056_v26  ;;  %v1222_v30 = vpop.f32.mrb[9].mxu1 }
 0x7d4   :  { %v1668_v31 = vadd.f32 %v1222_v30, %v1051_v27 }
 0x7d5   :  { %vm1234_vm1 = vcmp.ge.f32.partialorder %v1666_v29, 0.0  ;;  %v1236_v32 = vmul.f32 0.2, %v1666_v29 }
 0x7d6   :  { %vm1233_vm2 = vcmp.ge.f32.partialorder %v1668_v31, 0.0  ;;  %v1235_v33 = vmul.f32 0.2, %v1668_v31 }
 0x7d7   :  { %v1238_v34 = vsel %vm1234_vm1, %v1666_v29, %v1236_v32 }
 0x7d8   :  { %1240 = vst.msk [vmem:[#allocation2 + $0x8] sm:$0xff] %vm894_vm3, %v1238_v34  ;;  %v1237_v35 = vsel %vm1233_vm2, %v1668_v31, %v1235_v33 }
 0x7d9   :  { %1239 = vst.msk [vmem:[#allocation2] sm:$0xff] %vm894_vm3, %v1237_v35 }
 0x7da   :  { %1729 = shalt.err (!%p1726_p4)
}
 0x7db   :  { %s1730_s27 = scalar_lea.hbm %s2104_s4, 256 }
 0x7dc   :  { %p1731_p5 = scmp.ne.s32.totalorder %s2104_s4, %s1730_s27  ;;  %p1734_p6 = scmp.lt.u32.totalorder %s1730_s27, %s2104_s4 }
 0x7de   :  { %p1736_p7 = pnand %p1734_p6, %p1731_p5 }
 0x7e0   :  { %1739 = shalt.err (!%p1736_p7)
}
 0x7e1   :  { %s1747_s6 = smov 128   ;;  %s1748_s7 = smov 8  }
 0x7e2   :  { %1252 = dma.vmem_to_hbm [thread:$0]  %s1247_s24, 256, %s2104_s4, [#allocation3], %s1747_s6, %s1747_s6, %s1748_s7  }
 0x7e3   :  { %1740 = dma.done.wait [#allocation3], 256  }
 0x7e4   :  { %1741 = vsyncadd [#allocation3], 4294967040 }
 0x7e5   :  { %1260 = vsyncpa [#allocation3], 1 }

</bundles_post_ra>
